<compile_context>
chip_gen: v5e
topology: v5e:2x2
jax: 0.10.0
libtpu: 0.0.40
codegen_flags: <defaults>
</compile_context>

<pallas_src>
import functools

import jax
import jax.numpy as jnp
from jax.experimental import pallas as pl
from jax.experimental.pallas import tpu as pltpu


def _softplus(x):
    # softplus(x) = max(x, 0) + log(1 + exp(-|x|))   (only exp/log/max/abs -> safe lowering)
    return jnp.maximum(x, 0.0) + jnp.log(1.0 + jnp.exp(-jnp.abs(x)))


def _expm1_neg(x):
    # Numerically stable expm1 for x <= 0: expm1(x) = tanh(x/2) * (exp(x) + 1).
    # Accurate near 0 (tanh(x/2) ~ x/2, exp(x)+1 ~ 2); uses only exp/tanh (EUP, not bottleneck).
    return jnp.tanh(0.5 * x) * (jnp.exp(x) + 1.0)


def _traj_encoder_kernel(obs_ref, wb1_ref, bb1_ref, wb2_ref, bb2_ref,
                         wfc_ref, bfc_ref, w12_ref, b12_ref,
                         out_ref, *, option_dims):
    x = obs_ref[...]                                   # (TILE_B, obs_dim) bf16

    # FlattenMLPBase: Linear -> Tanh -> Linear -> Tanh   (bf16 MXU, f32 accumulate + f32 tanh)
    h = jnp.tanh(jnp.dot(x, wb1_ref[...], preferred_element_type=jnp.float32)
                 + bb1_ref[...])
    h = jnp.tanh(jnp.dot(h.astype(jnp.bfloat16), wb2_ref[...],
                         preferred_element_type=jnp.float32) + bb2_ref[...])

    # self.fc: Linear -> ELU(alpha=1)
    f = jnp.dot(h.astype(jnp.bfloat16), wfc_ref[...],
                preferred_element_type=jnp.float32) + bfc_ref[...]
    f = jnp.where(f > 0, f, _expm1_neg(jnp.minimum(f, 0.0)))

    # self.fc12: fused (mu | std_raw) head -> one matmul, one (TILE_B, 2D) store.
    p = jnp.dot(f.astype(jnp.bfloat16), w12_ref[...],
                preferred_element_type=jnp.float32) + b12_ref[...]

    # get_mean_std: left half = mu (identity), right half = std = softplus(std_raw).
    col = jax.lax.broadcasted_iota(jnp.int32, p.shape, 1)
    out_ref[...] = jnp.where(col < option_dims, p, _softplus(p))


def trajectory_encoder(final_state, params, *, omega_option_dims, tile_b=1024):
    """TrajectoryEncoder.forward (final_state / mlp base / continuous options).

    Returns (mu, std) of the Normal distribution the module would return.
    Batch many trajectories into one call: the kernel tiles rows over a 1-D grid and keeps
    all weights VMEM-resident across the grid.
    """
    B = final_state.shape[0]
    obs = final_state.reshape(B, -1).astype(jnp.float32)        # FlattenMLPBase flatten
    obs_dim = obs.shape[1]
    D = omega_option_dims

    # bf16 operands for the MXU; biases (and all nonlinearity math) stay f32.
    wb1 = params["wb1"].astype(jnp.bfloat16)
    wb2 = params["wb2"].astype(jnp.bfloat16)
    wfc = params["wfc"].astype(jnp.bfloat16)
    w12 = params["w12"].astype(jnp.bfloat16)
    bb1 = params["bb1"].astype(jnp.float32)
    bb2 = params["bb2"].astype(jnp.float32)
    bfc = params["bfc"].astype(jnp.float32)
    b12 = params["b12"].astype(jnp.float32)
    Hb = wb1.shape[1]
    H = wfc.shape[1]

    # Row tiling: pad batch to a multiple of 8 (sublane), then to a multiple of the row tile.
    Bp = ((B + 7) // 8) * 8
    TILE_B = min(Bp, tile_b)
    Bp = ((Bp + TILE_B - 1) // TILE_B) * TILE_B
    if Bp != B:
        obs = jnp.pad(obs, ((0, Bp - B), (0, 0)))
    obs = obs.astype(jnp.bfloat16)
    grid = (Bp // TILE_B,)

    flops = 2 * Bp * (obs_dim * Hb + Hb * Hb + Hb * H + H * 2 * D)
    transcendentals = Bp * (2 * Hb + 2 * H + 2 * D)
    bytes_accessed = (obs.size * 2
                      + 2 * (wb1.size + wb2.size + wfc.size + w12.size)
                      + 4 * (bb1.size + bb2.size + bfc.size + b12.size)
                      + Bp * 2 * D * 4)

    def _resident(shape):
        # Weights/biases: full-block, constant block index -> DMA'd once, resident across grid.
        return pl.BlockSpec(shape, lambda i: (0, 0), memory_space=pltpu.MemorySpace.VMEM)

    out = pl.pallas_call(
        functools.partial(_traj_encoder_kernel, option_dims=D),
        out_shape=jax.ShapeDtypeStruct((Bp, 2 * D), jnp.float32),
        grid=grid,
        in_specs=[
            pl.BlockSpec((TILE_B, obs_dim), lambda i: (i, 0),
                         memory_space=pltpu.MemorySpace.VMEM),
            _resident(wb1.shape), _resident(bb1.shape),
            _resident(wb2.shape), _resident(bb2.shape),
            _resident(wfc.shape), _resident(bfc.shape),
            _resident(w12.shape), _resident(b12.shape),
        ],
        out_specs=pl.BlockSpec((TILE_B, 2 * D), lambda i: (i, 0),
                               memory_space=pltpu.MemorySpace.VMEM),
        compiler_params=pltpu.CompilerParams(dimension_semantics=("parallel",)),
        cost_estimate=pl.CostEstimate(flops=flops, transcendentals=transcendentals,
                                      bytes_accessed=bytes_accessed),
    )(obs, wb1, bb1, wb2, bb2, wfc, bfc, w12, b12)

    out = out[:B]
    return out[:, :D], out[:, D:]


def _reference(final_state, params, D):
    """Pure-JAX reference mirroring the kernel numerics (bf16 matmuls, f32 accumulate)."""
    bf = jnp.bfloat16
    obs = final_state.reshape(final_state.shape[0], -1).astype(jnp.float32)
    h = jnp.tanh(jnp.dot(obs.astype(bf), params["wb1"].astype(bf),
                         preferred_element_type=jnp.float32) + params["bb1"])
    h = jnp.tanh(jnp.dot(h.astype(bf), params["wb2"].astype(bf),
                         preferred_element_type=jnp.float32) + params["bb2"])
    f = jnp.dot(h.astype(bf), params["wfc"].astype(bf),
                preferred_element_type=jnp.float32) + params["bfc"]
    f = jnp.where(f > 0, f, jnp.expm1(jnp.minimum(f, 0.0)))
    p = jnp.dot(f.astype(bf), params["w12"].astype(bf),
                preferred_element_type=jnp.float32) + params["b12"]
    return p[:, :D], jax.nn.softplus(p[:, D:])


def _init_params(key, obs_dim, Hb, H, D):
    ks = jax.random.split(key, 8)
    scale = 0.1
    return {
        "wb1": scale * jax.random.normal(ks[0], (obs_dim, Hb), jnp.float32),
        "bb1": scale * jax.random.normal(ks[1], (1, Hb), jnp.float32),
        "wb2": scale * jax.random.normal(ks[2], (Hb, Hb), jnp.float32),
        "bb2": scale * jax.random.normal(ks[3], (1, Hb), jnp.float32),
        "wfc": scale * jax.random.normal(ks[4], (Hb, H), jnp.float32),
        "bfc": scale * jax.random.normal(ks[5], (1, H), jnp.float32),
        "w12": scale * jax.random.normal(ks[6], (H, 2 * D), jnp.float32),
        "b12": scale * jax.random.normal(ks[7], (1, 2 * D), jnp.float32),
    }


if __name__ == "__main__":
    # Config consistent with the module: flattened final-state obs of dim 64,
    # base hidden (base_kwargs['hidden_size']) = 32, hidden_size = 32, omega_option_dims = 8.
    B = 8
    obs_dim = 64
    Hb = 32
    H = 32
    D = 8

    key = jax.random.PRNGKey(0)
    k_params, k_obs, k_obs2 = jax.random.split(key, 3)

    params = _init_params(k_params, obs_dim, Hb, H, D)
    final_state = jax.random.normal(k_obs, (B, obs_dim), jnp.float32)

    # Small-batch path (single grid step).
    mu, std = trajectory_encoder(final_state, params, omega_option_dims=D)
    jax.block_until_ready((mu, std))
    mu_ref, std_ref = _reference(final_state, params, D)
    assert mu.shape == (B, D) and std.shape == (B, D)
    assert jnp.allclose(mu, mu_ref, rtol=5e-3, atol=1e-3), "mu mismatch"
    assert jnp.allclose(std, std_ref, rtol=5e-3, atol=1e-3), "std mismatch"

    # Batched path: many trajectories in ONE pallas_call (row grid + resident weights + padding).
    B2 = 200
    fs2 = jax.random.normal(k_obs2, (B2, obs_dim), jnp.float32)
    mu2, std2 = trajectory_encoder(fs2, params, omega_option_dims=D, tile_b=64)
    jax.block_until_ready((mu2, std2))
    mu2_ref, std2_ref = _reference(fs2, params, D)
    assert mu2.shape == (B2, D) and std2.shape == (B2, D)
    assert jnp.allclose(mu2, mu2_ref, rtol=5e-3, atol=1e-3), "batched mu mismatch"
    assert jnp.allclose(std2, std2_ref, rtol=5e-3, atol=1e-3), "batched std mismatch"

    print("KERNEL_OK")
</pallas_src>

<mosaic_0001>
module attributes {stable_mosaic.version = 11 : i64} {
  func.func @_traj_encoder_kernel(%arg0: i32, %arg1: memref<8x64xbf16, #tpu.memory_space<vmem>>, %arg2: memref<64x32xbf16, #tpu.memory_space<vmem>>, %arg3: memref<1x32xf32, #tpu.memory_space<vmem>>, %arg4: memref<32x32xbf16, #tpu.memory_space<vmem>>, %arg5: memref<1x32xf32, #tpu.memory_space<vmem>>, %arg6: memref<32x32xbf16, #tpu.memory_space<vmem>>, %arg7: memref<1x32xf32, #tpu.memory_space<vmem>>, %arg8: memref<32x16xbf16, #tpu.memory_space<vmem>>, %arg9: memref<1x16xf32, #tpu.memory_space<vmem>>, %arg10: memref<8x16xf32, #tpu.memory_space<vmem>>) attributes {dimension_semantics = [#tpu.dimension_semantics<parallel>], iteration_bounds = array<i64: 1>, scalar_prefetch = 0 : i64, scratch_operands = 0 : i64, tpu.core_type = #tpu.core_type<tc>, window_params = [{transform_indices = @transform_0, window_bounds = array<i64: 8, 64>}, {pipeline_mode = #tpu.pipeline_mode<synchronous>, transform_indices = @transform_1, window_bounds = array<i64: 64, 32>}, {pipeline_mode = #tpu.pipeline_mode<synchronous>, transform_indices = @transform_2, window_bounds = array<i64: 1, 32>}, {pipeline_mode = #tpu.pipeline_mode<synchronous>, transform_indices = @transform_3, window_bounds = array<i64: 32, 32>}, {pipeline_mode = #tpu.pipeline_mode<synchronous>, transform_indices = @transform_4, window_bounds = array<i64: 1, 32>}, {pipeline_mode = #tpu.pipeline_mode<synchronous>, transform_indices = @transform_5, window_bounds = array<i64: 32, 32>}, {pipeline_mode = #tpu.pipeline_mode<synchronous>, transform_indices = @transform_6, window_bounds = array<i64: 1, 32>}, {pipeline_mode = #tpu.pipeline_mode<synchronous>, transform_indices = @transform_7, window_bounds = array<i64: 32, 16>}, {pipeline_mode = #tpu.pipeline_mode<synchronous>, transform_indices = @transform_8, window_bounds = array<i64: 1, 16>}, {transform_indices = @transform_9, window_bounds = array<i64: 8, 16>}]} {
    %c0 = arith.constant 0 : index
    %c0_0 = arith.constant 0 : index
    %0 = vector.load %arg1[%c0, %c0_0] : memref<8x64xbf16, #tpu.memory_space<vmem>>, vector<8x64xbf16>
    %c0_1 = arith.constant 0 : index
    %c0_2 = arith.constant 0 : index
    %1 = vector.load %arg2[%c0_1, %c0_2] : memref<64x32xbf16, #tpu.memory_space<vmem>>, vector<64x32xbf16>
    %cst = arith.constant dense<0.000000e+00> : vector<8x32xf32>
    %2 = tpu.matmul %0, %1, %cst {dimension_numbers = #tpu.dot_dimension_numbers<[1], [0], [0], [1], [0, 0, 1, 1], [], []>} : vector<8x64xbf16>, vector<64x32xbf16>, vector<8x32xf32> -> vector<8x32xf32>
    %c0_3 = arith.constant 0 : index
    %c0_4 = arith.constant 0 : index
    %3 = vector.load %arg3[%c0_3, %c0_4] : memref<1x32xf32, #tpu.memory_space<vmem>>, vector<1x32xf32>
    %4 = vector.broadcast %3 : vector<1x32xf32> to vector<8x32xf32>
    %5 = arith.addf %2, %4 : vector<8x32xf32>
    %6 = math.tanh %5 : vector<8x32xf32>
    %7 = arith.truncf %6 : vector<8x32xf32> to vector<8x32xbf16>
    %c0_5 = arith.constant 0 : index
    %c0_6 = arith.constant 0 : index
    %8 = vector.load %arg4[%c0_5, %c0_6] : memref<32x32xbf16, #tpu.memory_space<vmem>>, vector<32x32xbf16>
    %cst_7 = arith.constant dense<0.000000e+00> : vector<8x32xf32>
    %9 = tpu.matmul %7, %8, %cst_7 {dimension_numbers = #tpu.dot_dimension_numbers<[1], [0], [0], [1], [0, 0, 1, 1], [], []>} : vector<8x32xbf16>, vector<32x32xbf16>, vector<8x32xf32> -> vector<8x32xf32>
    %c0_8 = arith.constant 0 : index
    %c0_9 = arith.constant 0 : index
    %10 = vector.load %arg5[%c0_8, %c0_9] : memref<1x32xf32, #tpu.memory_space<vmem>>, vector<1x32xf32>
    %11 = vector.broadcast %10 : vector<1x32xf32> to vector<8x32xf32>
    %12 = arith.addf %9, %11 : vector<8x32xf32>
    %13 = math.tanh %12 : vector<8x32xf32>
    %14 = arith.truncf %13 : vector<8x32xf32> to vector<8x32xbf16>
    %c0_10 = arith.constant 0 : index
    %c0_11 = arith.constant 0 : index
    %15 = vector.load %arg6[%c0_10, %c0_11] : memref<32x32xbf16, #tpu.memory_space<vmem>>, vector<32x32xbf16>
    %cst_12 = arith.constant dense<0.000000e+00> : vector<8x32xf32>
    %16 = tpu.matmul %14, %15, %cst_12 {dimension_numbers = #tpu.dot_dimension_numbers<[1], [0], [0], [1], [0, 0, 1, 1], [], []>} : vector<8x32xbf16>, vector<32x32xbf16>, vector<8x32xf32> -> vector<8x32xf32>
    %c0_13 = arith.constant 0 : index
    %c0_14 = arith.constant 0 : index
    %17 = vector.load %arg7[%c0_13, %c0_14] : memref<1x32xf32, #tpu.memory_space<vmem>>, vector<1x32xf32>
    %18 = vector.broadcast %17 : vector<1x32xf32> to vector<8x32xf32>
    %19 = arith.addf %16, %18 : vector<8x32xf32>
    %cst_15 = arith.constant 0.000000e+00 : f32
    %20 = vector.broadcast %cst_15 : f32 to vector<8x32xf32>
    %21 = arith.cmpf ogt, %19, %20 : vector<8x32xf32>
    %cst_16 = arith.constant 0.000000e+00 : f32
    %22 = vector.broadcast %cst_16 : f32 to vector<8x32xf32>
    %23 = arith.minimumf %19, %22 : vector<8x32xf32>
    %cst_17 = arith.constant 5.000000e-01 : f32
    %24 = vector.broadcast %cst_17 : f32 to vector<8x32xf32>
    %25 = arith.mulf %24, %23 : vector<8x32xf32>
    %26 = math.tanh %25 : vector<8x32xf32>
    %27 = math.exp %23 : vector<8x32xf32>
    %cst_18 = arith.constant 1.000000e+00 : f32
    %28 = vector.broadcast %cst_18 : f32 to vector<8x32xf32>
    %29 = arith.addf %27, %28 : vector<8x32xf32>
    %30 = arith.mulf %26, %29 : vector<8x32xf32>
    %31 = arith.select %21, %19, %30 : vector<8x32xi1>, vector<8x32xf32>
    %32 = arith.truncf %31 : vector<8x32xf32> to vector<8x32xbf16>
    %c0_19 = arith.constant 0 : index
    %c0_20 = arith.constant 0 : index
    %33 = vector.load %arg8[%c0_19, %c0_20] : memref<32x16xbf16, #tpu.memory_space<vmem>>, vector<32x16xbf16>
    %cst_21 = arith.constant dense<0.000000e+00> : vector<8x16xf32>
    %34 = tpu.matmul %32, %33, %cst_21 {dimension_numbers = #tpu.dot_dimension_numbers<[1], [0], [0], [1], [0, 0, 1, 1], [], []>} : vector<8x32xbf16>, vector<32x16xbf16>, vector<8x16xf32> -> vector<8x16xf32>
    %c0_22 = arith.constant 0 : index
    %c0_23 = arith.constant 0 : index
    %35 = vector.load %arg9[%c0_22, %c0_23] : memref<1x16xf32, #tpu.memory_space<vmem>>, vector<1x16xf32>
    %36 = vector.broadcast %35 : vector<1x16xf32> to vector<8x16xf32>
    %37 = arith.addf %34, %36 : vector<8x16xf32>
    %38 = tpu.iota {dimensions = array<i32: 1>} : vector<8x16xi32>
    %c8_i32 = arith.constant 8 : i32
    %39 = vector.broadcast %c8_i32 : i32 to vector<8x16xi32>
    %40 = arith.cmpi slt, %38, %39 : vector<8x16xi32>
    %cst_24 = arith.constant 0.000000e+00 : f32
    %41 = vector.broadcast %cst_24 : f32 to vector<8x16xf32>
    %42 = arith.maximumf %37, %41 : vector<8x16xf32>
    %43 = math.absf %37 : vector<8x16xf32>
    %cst_25 = arith.constant 0.000000e+00 : f32
    %44 = vector.broadcast %cst_25 : f32 to vector<8x16xf32>
    %45 = arith.subf %44, %43 : vector<8x16xf32>
    %46 = math.exp %45 : vector<8x16xf32>
    %cst_26 = arith.constant 1.000000e+00 : f32
    %47 = vector.broadcast %cst_26 : f32 to vector<8x16xf32>
    %48 = arith.addf %47, %46 : vector<8x16xf32>
    %49 = math.log %48 : vector<8x16xf32>
    %50 = arith.addf %42, %49 : vector<8x16xf32>
    %51 = arith.select %40, %37, %50 : vector<8x16xi1>, vector<8x16xf32>
    %c0_27 = arith.constant 0 : index
    %c0_28 = arith.constant 0 : index
    %52 = vector.load %arg10[%c0_27, %c0_28] : memref<8x16xf32, #tpu.memory_space<vmem>>, vector<8x16xf32>
    tpu.vector_store %arg10[%c0_27, %c0_28], %51 {strides = array<i32>} : memref<8x16xf32, #tpu.memory_space<vmem>>, vector<8x16xf32>,
    return
  }
  func.func @transform_0(%arg0: i32) -> (i32, i32) {
    %c0_i32 = arith.constant 0 : i32
    %c0_i32_0 = arith.constant 0 : i32
    return %arg0, %c0_i32 : i32, i32
  }
  func.func @transform_1(%arg0: i32) -> (i32, i32) {
    %c0_i32 = arith.constant 0 : i32
    %c0_i32_0 = arith.constant 0 : i32
    %c0_i32_1 = arith.constant 0 : i32
    return %c0_i32, %c0_i32_0 : i32, i32
  }
  func.func @transform_2(%arg0: i32) -> (i32, i32) {
    %c0_i32 = arith.constant 0 : i32
    %c0_i32_0 = arith.constant 0 : i32
    %c0_i32_1 = arith.constant 0 : i32
    return %c0_i32, %c0_i32_0 : i32, i32
  }
  func.func @transform_3(%arg0: i32) -> (i32, i32) {
    %c0_i32 = arith.constant 0 : i32
    %c0_i32_0 = arith.constant 0 : i32
    %c0_i32_1 = arith.constant 0 : i32
    return %c0_i32, %c0_i32_0 : i32, i32
  }
  func.func @transform_4(%arg0: i32) -> (i32, i32) {
    %c0_i32 = arith.constant 0 : i32
    %c0_i32_0 = arith.constant 0 : i32
    %c0_i32_1 = arith.constant 0 : i32
    return %c0_i32, %c0_i32_0 : i32, i32
  }
  func.func @transform_5(%arg0: i32) -> (i32, i32) {
    %c0_i32 = arith.constant 0 : i32
    %c0_i32_0 = arith.constant 0 : i32
    %c0_i32_1 = arith.constant 0 : i32
    return %c0_i32, %c0_i32_0 : i32, i32
  }
  func.func @transform_6(%arg0: i32) -> (i32, i32) {
    %c0_i32 = arith.constant 0 : i32
    %c0_i32_0 = arith.constant 0 : i32
    %c0_i32_1 = arith.constant 0 : i32
    return %c0_i32, %c0_i32_0 : i32, i32
  }
  func.func @transform_7(%arg0: i32) -> (i32, i32) {
    %c0_i32 = arith.constant 0 : i32
    %c0_i32_0 = arith.constant 0 : i32
    %c0_i32_1 = arith.constant 0 : i32
    return %c0_i32, %c0_i32_0 : i32, i32
  }
  func.func @transform_8(%arg0: i32) -> (i32, i32) {
    %c0_i32 = arith.constant 0 : i32
    %c0_i32_0 = arith.constant 0 : i32
    %c0_i32_1 = arith.constant 0 : i32
    return %c0_i32, %c0_i32_0 : i32, i32
  }
  func.func @transform_9(%arg0: i32) -> (i32, i32) {
    %c0_i32 = arith.constant 0 : i32
    %c0_i32_0 = arith.constant 0 : i32
    return %arg0, %c0_i32 : i32, i32
  }
}

</mosaic_0001>

<bundles_post_ra>
// kernel: tpu_custom_call.1
= control target key start
LH: loop header
LB: loop body
LE: loop exit
PB: predicated region body
PF: predicated region fallthrough
CT: control target
= control target key end

     0   :  { %s441_s0 = inlined_call_operand.vmem [shape: bf16[8,64], index: 0, kind: input, shape index: {}]   ;;  %s442_s1 = inlined_call_operand.vmem [shape: bf16[64,32], index: 1, kind: input, shape index: {}]   ;;  %s443_s2 = inlined_call_operand.vmem [shape: f32[1,32], index: 2, kind: input, shape index: {}]   ;;  %s444_s3 = inlined_call_operand.vmem [shape: bf16[32,32], index: 3, kind: input, shape index: {}]   ;;  %s445_s4 = inlined_call_operand.vmem [shape: f32[1,32], index: 4, kind: input, shape index: {}]   ;;  %s446_s5 = inlined_call_operand.vmem [shape: bf16[32,32], index: 5, kind: input, shape index: {}]   ;;  %s447_s6 = inlined_call_operand.vmem [shape: f32[1,32], index: 6, kind: input, shape index: {}]   ;;  %s448_s7 = inlined_call_operand.vmem [shape: bf16[32,16], index: 7, kind: input, shape index: {}]   ;;  %s449_s8 = inlined_call_operand.vmem [shape: f32[1,16], index: 8, kind: input, shape index: {}]   ;;  %s450_s9 = inlined_call_operand.hbm [shape: f32[8,16], index: 9, kind: output, shape index: {}]  }
   0x1   :  { %v289_v0 = vld [vmem:[%s442_s1 + $0x18] sm:$0xff]  ;;  %v288_v1 = vld [vmem:[%s442_s1 + $0x10] sm:$0xff] }
   0x2   :  { %79 = vmatpush.bf16.msra.mxu0 %v289_v0 }
   0x3   :  { %14 = vsyncpa [#allocation3], 0  ;;  %v287_v2 = vld [vmem:[%s442_s1 + $0x8] sm:$0xff]  ;;  %v286_v3 = vld [vmem:[%s442_s1] sm:$0xff]  ;;  %vm71_vm0 = vcmask 523264   ;;  %vm110_vm1 = vcmask 261120   ;;  %v211_v45 = vlaneseq }
   0x4   :  { %v34_v4 = vld [vmem:[%s441_s0] sm:$0xf]  ;;  %v291_v5 = vld [vmem:[%s444_s3 + $0x8] sm:$0xff]  ;;  %vm224_vm4 = vcmask 130048  }
   0x5   :  { %120 = vmatpush.bf16.msra.mxu1 %v291_v5  ;;  %v290_v6 = vld [vmem:[%s444_s3] sm:$0xff]  ;;  %v293_v13 = vld [vmem:[%s446_s5 + $0x8] sm:$0xff]  ;;  %v212_v46 = vand.u32 127, %v211_v45 }
   0x6   :  { %80 = vmatpush.bf16.msra.mxu0 %v288_v1  ;;  %v297_v7 = vld [vmem:[%s443_s2] ss:$0 sm:$0xff]  ;;  %158 = vmatpush.bf16.msra.mxu2 %v293_v13  ;;  %v295_v21 = vld [vmem:[%s448_s7 + $0x8] sm:$0xff] }
   0x7   :  { %v292_v14 = vld [vmem:[%s446_s5] sm:$0xff]  ;;  %204 = vmatpush.bf16.msra.mxu3 %v295_v21  ;;  %vm213_vm3 = vcmp.lt.s32.totalorder %v212_v46, 8 }
   0x8   :  { %v298_v15 = vld [vmem:[%s445_s4] ss:$0 sm:$0xff] }
   0x9   :  { %121 = vmatpush.bf16.msra.mxu1 %v290_v6  ;;  %v294_v22 = vld [vmem:[%s448_s7] sm:$0xff] }
   0xa   :  { %81 = vmatpush.bf16.msra.mxu0 %v287_v2  ;;  %159 = vmatpush.bf16.msra.mxu2 %v292_v14  ;;  %v299_v23 = vld [vmem:[%s447_s6] ss:$0 sm:$0xff]  ;;  %s339_s6 = smov [#allocation2]  }
   0xb   :  { %205 = vmatpush.bf16.msra.mxu3 %v294_v22  ;;  %v300_v36 = vld [vmem:[%s449_s8] ss:$0 sm:$0xff]  ;;  %s231_s11 = sshll.u32 %s339_s6, 4  ;;  %s233_s8 = sshll.u32 %s450_s9, 4  ;;  %s232_s11 = int_to_ptr.vmem [resolvable:$true] %s231_s11  ;;  %s234_s8 = int_to_ptr.hbm [resolvable:$true] %s233_s8 }
   0xe   :  { %82 = vmatpush.bf16.msra.mxu0 %v286_v3 }
  0x11   :  { %258 = vmatmul.msk.bf16.vlgmr.msra.gmra.mxu0 %vm71_vm0, %v34_v4 }
  0x8e   :  { %v84_v8 = vpop.f32.mrf.mxu0 }
  0x8f   :  { %v85_v9 = vadd.f32 %v297_v7, %v84_v8 }
  0x91   :  { %301 = vtanh.f32 %v85_v9 }
  0x96   :  { %v86_v10 = vpop.f32.mrf.mxu0 }
  0x97   :  { %v302_v11 = vpop.eup %301 }
  0x98   :  { %v89_v12 = vpack.c.bf16 %v302_v11, %v302_v11 }
  0x9a   :  { %267 = vmatmul.msk.bf16.vlgmr.msra.gmra.mxu1 %vm110_vm1, %v89_v12 }
 0x117   :  { %v123_v16 = vpop.f32.mrf.mxu1 }
 0x118   :  { %v124_v17 = vadd.f32 %v298_v15, %v123_v16 }
 0x11a   :  { %303 = vtanh.f32 %v124_v17 }
 0x11f   :  { %v125_v18 = vpop.f32.mrf.mxu1 }
 0x120   :  { %v304_v19 = vpop.eup %303 }
 0x121   :  { %v128_v20 = vpack.c.bf16 %v304_v19, %v304_v19 }
 0x123   :  { %276 = vmatmul.msk.bf16.vlgmr.msra.gmra.mxu2 %vm110_vm1, %v128_v20 }
 0x1a6   :  { %v161_v24 = vpop.f32.mrf.mxu2 }
 0x1a7   :  { %v162_v25 = vadd.f32 %v299_v23, %v161_v24 }
 0x1a9   :  { %v166_v26 = vmin.f32 %v162_v25, 0.0  ;;  %vm165_vm2 = vcmp.gt.f32.partialorder %v162_v25, 0.0 }
 0x1ab   :  { %v169_v27 = vmul.f32 1.442695, %v166_v26  ;;  %v167_v28 = vmul.f32 0.5, %v166_v26 }
 0x1ad   :  { %305 = vpow2.f32 %v169_v27 }
 0x1ae   :  { %v163_v29 = vpop.f32.mrf.mxu2  ;;  %307 = vtanh.f32 %v167_v28 }
 0x1b3   :  { %v306_v30 = vpop.eup %305 }
 0x1b4   :  { %v171_v31 = vadd.f32 1.0, %v306_v30  ;;  %v308_v32 = vpop.eup %307 }
 0x1b6   :  { %v172_v33 = vmul.f32 %v308_v32, %v171_v31 }
 0x1b8   :  { %v173_v34 = vsel %vm165_vm2, %v162_v25, %v172_v33 }
 0x1b9   :  { %v174_v35 = vpack.c.bf16 %v173_v34, %v173_v34 }
 0x1bb   :  { %285 = vmatmul.msk.bf16.vlgmr.msra.gmra.mxu3 %vm110_vm1, %v174_v35 }
 0x23e   :  { %v207_v37 = vpop.f32.mrf.mxu3 }
 0x23f   :  { %v208_v38 = vadd.f32 %v300_v36, %v207_v37 }
 0x241   :  { %v215_v39 = vand.u32 2147483647, %v208_v38  ;;  %v214_v48 = vmax.f32 %v208_v38, 0.0 }
 0x243   :  { %v216_v40 = vsub.f32 0.0, %v215_v39 }
 0x245   :  { %v217_v41 = vmul.f32 1.442695, %v216_v40 }
 0x246   :  { %v209_v42 = vpop.f32.mrf.mxu3 }
 0x247   :  { %309 = vpow2.f32 %v217_v41 }
 0x24d   :  { %v310_v43 = vpop.eup %309 }
 0x24e   :  { %v219_v44 = vadd.f32 1.0, %v310_v43 }
 0x250   :  { %311 = vlog2.f32 %v219_v44 }
 0x256   :  { %v312_v47 = vpop.eup %311 }
 0x257   :  { %v221_v49 = vmul.f32 0.6931472, %v312_v47 }
 0x259   :  { %v222_v50 = vadd.f32 %v221_v49, %v214_v48 }
 0x25b   :  { %v223_v51 = vsel %vm213_vm3, %v208_v38, %v222_v50 }
 0x25c   :  { %225 = vst.msk [vmem:[#allocation2] sm:$0xff] %vm224_vm4, %v223_v51 }
 0x25d   :  { %236 = dma.vmem_to_hbm [thread:$0]  %s232_s11, 128, %s234_s8, [#allocation3]  }
 0x25e   :  { %337 = dma.done.wait [#allocation3], 128  }
 0x25f   :  { %338 = vsyncadd [#allocation3], 4294967168 }
 0x260   :  { %241 = vsyncpa [#allocation3], 1 }

</bundles_post_ra>
